<compile_context>
chip_gen: v6e
topology: v6e:2x2x1
jax: 0.10.0
libtpu: 0.0.40
codegen_flags: <defaults>
</compile_context>

<pallas_src>
import math

import jax
import jax.numpy as jnp
from jax.experimental import pallas as pl
from jax.experimental.pallas import tpu as pltpu

# ----------------------------- model dimensions ----------------------------
BATCH = 8                         # original batch (multiple of 8 sublanes)
SEQ_LEN = 8
ALPHABET = 16
INPUT_DIM = SEQ_LEN * ALPHABET    # 128 -> lane-dense
NB_FEATURES = 4                   # number of classes / labels
NB_DISEASES = 1                   # encoder in = input_dim + nb_diseases*nb_features
LATENT = 8
ENC_H1 = 64
ENC_H2 = 32
DEC_H1 = 32
DEC_H2 = 64
CLAS_H1 = 32
CLAS_H2 = 32
REPEAT = BATCH * NB_FEATURES      # 32 rows for the unlabelled (y=None) branch

VMEM = pl.BlockSpec(memory_space=pltpu.MemorySpace.VMEM)


# ------------------------------ fused Pallas kernel --------------------------
def m2_vae_kernel(x_ref, xr_ref, y_ref, eps_ref,
                  we1x_ref, we1y_ref, be1_ref, we2_ref, be2_ref,
                  weml_ref, beml_ref,
                  wd1z_ref, wd1y_ref, bd1_ref, wd2_ref, bd2_ref, wd3_ref, bd3_ref,
                  wc1_ref, bc1_ref, wc2_ref, bc2_ref, wc3_ref, bc3_ref,
                  muls_ref, xr_rec_ref, qy_ref, logqy_ref):
    f32 = jnp.float32
    xr = xr_ref[...]                      # (R, 128) repeated inputs
    y = y_ref[...]                        # (R, nb_features) one-hot labels

    # ---- Encoder: relu(fc1(cat(z1_repeated, y))) written as split-weight
    #      matmuls so the wide activation stays lane-dense (last dim 128).
    h1 = jnp.maximum(
        jnp.dot(xr, we1x_ref[...], preferred_element_type=f32)
        + jnp.dot(y, we1y_ref[...], preferred_element_type=f32)
        + be1_ref[...], 0.0)
    h2 = jnp.maximum(
        jnp.dot(h1, we2_ref[...], preferred_element_type=f32) + be2_ref[...], 0.0)
    # mu / logsigma heads fused into one (enc_h2, 2*latent) matmul.
    muls = jnp.dot(h2, weml_ref[...], preferred_element_type=f32) + beml_ref[...]
    muls_ref[...] = muls
    mu = muls[:, :LATENT]
    logsigma = muls[:, LATENT:]

    # ---- reparameterization: z2 = mu + eps * exp(logsigma)
    # TODO(synk): assumes sample_diag_gaussian_original treats logsigma as
    # log-std (z = mu + eps*exp(logsigma)), not exp(0.5*logvar).
    z2 = mu + eps_ref[...] * jnp.exp(logsigma)

    # ---- NormalDecoder(cat(z2, y)) again as split-weight matmuls.
    d1 = jnp.maximum(
        jnp.dot(z2, wd1z_ref[...], preferred_element_type=f32)
        + jnp.dot(y, wd1y_ref[...], preferred_element_type=f32)
        + bd1_ref[...], 0.0)
    d2 = jnp.maximum(
        jnp.dot(d1, wd2_ref[...], preferred_element_type=f32) + bd2_ref[...], 0.0)
    xr_rec_ref[...] = (jnp.dot(d2, wd3_ref[...], preferred_element_type=f32)
                       + bd3_ref[...])                      # (R, 128) lane-dense

    # ---- Classifier on the ORIGINAL (un-repeated) batch z1.
    x = x_ref[...]                       # (B, 128)
    c1 = jnp.maximum(
        jnp.dot(x, wc1_ref[...], preferred_element_type=f32) + bc1_ref[...], 0.0)
    c2 = jnp.maximum(
        jnp.dot(c1, wc2_ref[...], preferred_element_type=f32) + bc2_ref[...], 0.0)
    logits = jnp.dot(c2, wc3_ref[...], preferred_element_type=f32) + bc3_ref[...]
    m = jnp.max(logits, axis=-1, keepdims=True)
    e = jnp.exp(logits - m)
    s = jnp.sum(e, axis=-1, keepdims=True)
    qy_ref[...] = e / s                                      # softmax
    logqy_ref[...] = (logits - m) - jnp.log(s)               # log-softmax


# ---------------------------------- wrapper ----------------------------------
def m2_vae_pallas(p, x_flat, x_rep, y, eps):
    weights = (
        p["enc_W1x"], p["enc_W1y"], p["enc_b1"],
        p["enc_W2"], p["enc_b2"],
        p["enc_Wmuls"], p["enc_bmuls"],
        p["dec_W1z"], p["dec_W1y"], p["dec_b1"],
        p["dec_W2"], p["dec_b2"],
        p["dec_W3"], p["dec_b3"],
        p["cls_W1"], p["cls_b1"],
        p["cls_W2"], p["cls_b2"],
        p["cls_W3"], p["cls_b3"],
    )
    R = x_rep.shape[0]
    B = x_flat.shape[0]
    out_shape = (
        jax.ShapeDtypeStruct((R, 2 * LATENT), jnp.float32),    # [mu | logsigma]
        jax.ShapeDtypeStruct((R, INPUT_DIM), jnp.float32),     # z1_r
        jax.ShapeDtypeStruct((B, NB_FEATURES), jnp.float32),   # qy_z1
        jax.ShapeDtypeStruct((B, NB_FEATURES), jnp.float32),   # logqy_z1
    )
    return pl.pallas_call(
        m2_vae_kernel,
        out_shape=out_shape,
        in_specs=[VMEM] * (4 + len(weights)),
        out_specs=[VMEM] * 4,
    )(x_flat, x_rep, y, eps, *weights)


def stacked_m2_vae_forward(p, z1, eps, y=None):
    B = z1.shape[0]
    z1_flat = z1.reshape(B, -1).astype(jnp.float32)
    if y is None:
        # TODO(synk): create_labels() is not defined in the provided source; the
        # standard M2 "enumerate every label for every sample" layout is assumed,
        # matching the row order of z1_flat.repeat(nb_features, 1) (label-major).
        y = jnp.repeat(jnp.eye(NB_FEATURES, dtype=jnp.float32), B, axis=0)
        z1_repeated = jnp.tile(z1_flat, (NB_FEATURES, 1))
    else:
        y = y.astype(jnp.float32)
        z1_repeated = z1_flat

    muls, z1_r, qy_z1, logqy_z1 = m2_vae_pallas(p, z1_flat, z1_repeated, y, eps)
    mu = muls[:, :LATENT]
    logsigma = muls[:, LATENT:]
    return mu, logsigma, z1_r, qy_z1, logqy_z1, y, z1_repeated


# ------------------------------ parameter init --------------------------------
def _xavier_normal(key, shape):
    fan_in, fan_out = shape
    std = math.sqrt(2.0 / (fan_in + fan_out))
    return (std * jax.random.normal(key, shape)).astype(jnp.float32)


def init_params(key):
    # Weights stored (in, out) so every F.linear(x, W, b) is x @ W + b in-kernel.
    # Encoder follows the spec's xavier_normal / constant(0.1, -5) init; the
    # decoder/classifier use deterministic xavier values (init does not affect
    # the forward-pass semantics being tested).
    ks = jax.random.split(key, 10)
    enc_in = INPUT_DIM + NB_DISEASES * NB_FEATURES
    dec_in = LATENT + NB_DISEASES * NB_FEATURES
    we1 = _xavier_normal(ks[0], (enc_in, ENC_H1))
    wd1 = _xavier_normal(ks[4], (dec_in, DEC_H1))
    wmu = _xavier_normal(ks[2], (ENC_H2, LATENT))
    wls = _xavier_normal(ks[3], (ENC_H2, LATENT))
    return {
        # encoder (fc1 split into x / y parts -> cat((x, y)) becomes 2 matmuls)
        "enc_W1x": we1[:INPUT_DIM],
        "enc_W1y": we1[INPUT_DIM:],
        "enc_b1": jnp.full((1, ENC_H1), 0.1, jnp.float32),
        "enc_W2": _xavier_normal(ks[1], (ENC_H1, ENC_H2)),
        "enc_b2": jnp.full((1, ENC_H2), 0.1, jnp.float32),
        "enc_Wmuls": jnp.concatenate([wmu, wls], axis=1),          # [mu | logsigma]
        "enc_bmuls": jnp.concatenate(
            [jnp.full((1, LATENT), 0.1, jnp.float32),
             jnp.full((1, LATENT), -5.0, jnp.float32)], axis=1),
        # NormalDecoder (fc1 split into z2 / y parts)
        "dec_W1z": wd1[:LATENT],
        "dec_W1y": wd1[LATENT:],
        "dec_b1": jnp.full((1, DEC_H1), 0.01, jnp.float32),
        "dec_W2": _xavier_normal(ks[5], (DEC_H1, DEC_H2)),
        "dec_b2": jnp.full((1, DEC_H2), 0.01, jnp.float32),
        "dec_W3": _xavier_normal(ks[6], (DEC_H2, INPUT_DIM)),
        "dec_b3": jnp.full((1, INPUT_DIM), 0.01, jnp.float32),
        # classifier
        "cls_W1": _xavier_normal(ks[7], (INPUT_DIM, CLAS_H1)),
        "cls_b1": jnp.full((1, CLAS_H1), 0.01, jnp.float32),
        "cls_W2": _xavier_normal(ks[8], (CLAS_H1, CLAS_H2)),
        "cls_b2": jnp.full((1, CLAS_H2), 0.01, jnp.float32),
        "cls_W3": _xavier_normal(ks[9], (CLAS_H2, NB_FEATURES)),
        "cls_b3": jnp.full((1, NB_FEATURES), 0.01, jnp.float32),
    }


# ----------------------------- pure-JAX reference -----------------------------
def ref_forward(p, z1_flat, z1_rep, y, eps):
    relu = lambda t: jnp.maximum(t, 0.0)
    h1 = relu(z1_rep @ p["enc_W1x"] + y @ p["enc_W1y"] + p["enc_b1"])
    h2 = relu(h1 @ p["enc_W2"] + p["enc_b2"])
    muls = h2 @ p["enc_Wmuls"] + p["enc_bmuls"]
    mu, logsigma = muls[:, :LATENT], muls[:, LATENT:]
    z2 = mu + eps * jnp.exp(logsigma)
    d1 = relu(z2 @ p["dec_W1z"] + y @ p["dec_W1y"] + p["dec_b1"])
    d2 = relu(d1 @ p["dec_W2"] + p["dec_b2"])
    z1_r = d2 @ p["dec_W3"] + p["dec_b3"]
    c1 = relu(z1_flat @ p["cls_W1"] + p["cls_b1"])
    c2 = relu(c1 @ p["cls_W2"] + p["cls_b2"])
    logits = c2 @ p["cls_W3"] + p["cls_b3"]
    return (mu, logsigma, z1_r,
            jax.nn.softmax(logits, axis=-1), jax.nn.log_softmax(logits, axis=-1))


# ---------------------------------- main ---------------------------------------
if __name__ == "__main__":
    key = jax.random.PRNGKey(0)
    k_params, k_x, k_eps = jax.random.split(key, 3)

    params = init_params(k_params)

    # z1: one-hot sequences (B, L, A) -> flattened to (B, 128) inside forward.
    tokens = jax.random.randint(k_x, (BATCH, SEQ_LEN), 0, ALPHABET)
    z1 = jax.nn.one_hot(tokens, ALPHABET, dtype=jnp.float32)

    # Reparameterization noise for the repeated batch, sampled on host
    # (sample_diag_gaussian_original's RNG lives outside the kernel).
    eps = jax.random.normal(k_eps, (REPEAT, LATENT), dtype=jnp.float32)

    outs = stacked_m2_vae_forward(params, z1, eps)
    jax.block_until_ready(outs)

    mu, logsigma, z1_r, qy_z1, logqy_z1, y, z1_rep = outs
    assert mu.shape == (REPEAT, LATENT)
    assert logsigma.shape == (REPEAT, LATENT)
    assert z1_r.shape == (REPEAT, INPUT_DIM)
    assert qy_z1.shape == (BATCH, NB_FEATURES)
    assert logqy_z1.shape == (BATCH, NB_FEATURES)
    assert y.shape == (REPEAT, NB_FEATURES)
    assert z1_rep.shape == (REPEAT, INPUT_DIM)

    # correctness check against a pure-JAX reference (loose tol for MXU precision)
    z1_flat = z1.reshape(BATCH, -1)
    rmu, rls, rz1r, rqy, rlogqy = ref_forward(params, z1_flat, z1_rep, y, eps)
    for name, got, want in [("mu", mu, rmu), ("logsigma", logsigma, rls),
                            ("z1_r", z1_r, rz1r), ("qy_z1", qy_z1, rqy),
                            ("logqy_z1", logqy_z1, rlogqy)]:
        if not jnp.allclose(got, want, atol=5e-2, rtol=5e-2):
            raise AssertionError(f"mismatch in {name}")

    print("KERNEL_OK")
</pallas_src>

<mosaic_0001>
module attributes {stable_mosaic.version = 11 : i64} {
  func.func @m2_vae_kernel(%arg0: memref<8x128xf32, #tpu.memory_space<vmem>>, %arg1: memref<32x128xf32, #tpu.memory_space<vmem>>, %arg2: memref<32x4xf32, #tpu.memory_space<vmem>>, %arg3: memref<32x8xf32, #tpu.memory_space<vmem>>, %arg4: memref<128x64xf32, #tpu.memory_space<vmem>>, %arg5: memref<4x64xf32, #tpu.memory_space<vmem>>, %arg6: memref<1x64xf32, #tpu.memory_space<vmem>>, %arg7: memref<64x32xf32, #tpu.memory_space<vmem>>, %arg8: memref<1x32xf32, #tpu.memory_space<vmem>>, %arg9: memref<32x16xf32, #tpu.memory_space<vmem>>, %arg10: memref<1x16xf32, #tpu.memory_space<vmem>>, %arg11: memref<8x32xf32, #tpu.memory_space<vmem>>, %arg12: memref<4x32xf32, #tpu.memory_space<vmem>>, %arg13: memref<1x32xf32, #tpu.memory_space<vmem>>, %arg14: memref<32x64xf32, #tpu.memory_space<vmem>>, %arg15: memref<1x64xf32, #tpu.memory_space<vmem>>, %arg16: memref<64x128xf32, #tpu.memory_space<vmem>>, %arg17: memref<1x128xf32, #tpu.memory_space<vmem>>, %arg18: memref<128x32xf32, #tpu.memory_space<vmem>>, %arg19: memref<1x32xf32, #tpu.memory_space<vmem>>, %arg20: memref<32x32xf32, #tpu.memory_space<vmem>>, %arg21: memref<1x32xf32, #tpu.memory_space<vmem>>, %arg22: memref<32x4xf32, #tpu.memory_space<vmem>>, %arg23: memref<1x4xf32, #tpu.memory_space<vmem>>, %arg24: memref<32x16xf32, #tpu.memory_space<vmem>>, %arg25: memref<32x128xf32, #tpu.memory_space<vmem>>, %arg26: memref<8x4xf32, #tpu.memory_space<vmem>>, %arg27: memref<8x4xf32, #tpu.memory_space<vmem>>) attributes {dimension_semantics = [], scalar_prefetch = 0 : i64, scratch_operands = 0 : i64, tpu.core_type = #tpu.core_type<tc>} {
    %c0 = arith.constant 0 : index
    %c0_0 = arith.constant 0 : index
    %0 = vector.load %arg1[%c0, %c0_0] : memref<32x128xf32, #tpu.memory_space<vmem>>, vector<32x128xf32>
    %c0_1 = arith.constant 0 : index
    %c0_2 = arith.constant 0 : index
    %1 = vector.load %arg2[%c0_1, %c0_2] : memref<32x4xf32, #tpu.memory_space<vmem>>, vector<32x4xf32>
    %c0_3 = arith.constant 0 : index
    %c0_4 = arith.constant 0 : index
    %2 = vector.load %arg4[%c0_3, %c0_4] : memref<128x64xf32, #tpu.memory_space<vmem>>, vector<128x64xf32>
    %cst = arith.constant dense<0.000000e+00> : vector<32x64xf32>
    %3 = tpu.matmul %0, %2, %cst {dimension_numbers = #tpu.dot_dimension_numbers<[1], [0], [0], [1], [0, 0, 1, 1], [], []>} : vector<32x128xf32>, vector<128x64xf32>, vector<32x64xf32> -> vector<32x64xf32>
    %c0_5 = arith.constant 0 : index
    %c0_6 = arith.constant 0 : index
    %4 = vector.load %arg5[%c0_5, %c0_6] : memref<4x64xf32, #tpu.memory_space<vmem>>, vector<4x64xf32>
    %cst_7 = arith.constant dense<0.000000e+00> : vector<32x64xf32>
    %5 = tpu.matmul %1, %4, %cst_7 {dimension_numbers = #tpu.dot_dimension_numbers<[1], [0], [0], [1], [0, 0, 1, 1], [], []>} : vector<32x4xf32>, vector<4x64xf32>, vector<32x64xf32> -> vector<32x64xf32>
    %6 = arith.addf %3, %5 : vector<32x64xf32>
    %c0_8 = arith.constant 0 : index
    %c0_9 = arith.constant 0 : index
    %7 = vector.load %arg6[%c0_8, %c0_9] : memref<1x64xf32, #tpu.memory_space<vmem>>, vector<1x64xf32>
    %8 = vector.broadcast %7 : vector<1x64xf32> to vector<32x64xf32>
    %9 = arith.addf %6, %8 : vector<32x64xf32>
    %cst_10 = arith.constant 0.000000e+00 : f32
    %10 = vector.broadcast %cst_10 : f32 to vector<32x64xf32>
    %11 = arith.maximumf %9, %10 : vector<32x64xf32>
    %c0_11 = arith.constant 0 : index
    %c0_12 = arith.constant 0 : index
    %12 = vector.load %arg7[%c0_11, %c0_12] : memref<64x32xf32, #tpu.memory_space<vmem>>, vector<64x32xf32>
    %cst_13 = arith.constant dense<0.000000e+00> : vector<32x32xf32>
    %13 = tpu.matmul %11, %12, %cst_13 {dimension_numbers = #tpu.dot_dimension_numbers<[1], [0], [0], [1], [0, 0, 1, 1], [], []>} : vector<32x64xf32>, vector<64x32xf32>, vector<32x32xf32> -> vector<32x32xf32>
    %c0_14 = arith.constant 0 : index
    %c0_15 = arith.constant 0 : index
    %14 = vector.load %arg8[%c0_14, %c0_15] : memref<1x32xf32, #tpu.memory_space<vmem>>, vector<1x32xf32>
    %15 = vector.broadcast %14 : vector<1x32xf32> to vector<32x32xf32>
    %16 = arith.addf %13, %15 : vector<32x32xf32>
    %cst_16 = arith.constant 0.000000e+00 : f32
    %17 = vector.broadcast %cst_16 : f32 to vector<32x32xf32>
    %18 = arith.maximumf %16, %17 : vector<32x32xf32>
    %c0_17 = arith.constant 0 : index
    %c0_18 = arith.constant 0 : index
    %19 = vector.load %arg9[%c0_17, %c0_18] : memref<32x16xf32, #tpu.memory_space<vmem>>, vector<32x16xf32>
    %cst_19 = arith.constant dense<0.000000e+00> : vector<32x16xf32>
    %20 = tpu.matmul %18, %19, %cst_19 {dimension_numbers = #tpu.dot_dimension_numbers<[1], [0], [0], [1], [0, 0, 1, 1], [], []>} : vector<32x32xf32>, vector<32x16xf32>, vector<32x16xf32> -> vector<32x16xf32>
    %c0_20 = arith.constant 0 : index
    %c0_21 = arith.constant 0 : index
    %21 = vector.load %arg10[%c0_20, %c0_21] : memref<1x16xf32, #tpu.memory_space<vmem>>, vector<1x16xf32>
    %22 = vector.broadcast %21 : vector<1x16xf32> to vector<32x16xf32>
    %23 = arith.addf %20, %22 : vector<32x16xf32>
    %c0_22 = arith.constant 0 : index
    %c0_23 = arith.constant 0 : index
    %24 = vector.load %arg24[%c0_22, %c0_23] : memref<32x16xf32, #tpu.memory_space<vmem>>, vector<32x16xf32>
    tpu.vector_store %arg24[%c0_22, %c0_23], %23 {strides = array<i32>} : memref<32x16xf32, #tpu.memory_space<vmem>>, vector<32x16xf32>,
    %25 = vector.extract_strided_slice %23 {offsets = [0, 0], sizes = [32, 8], strides = [1, 1]} : vector<32x16xf32> to vector<32x8xf32>
    %26 = vector.extract_strided_slice %23 {offsets = [0, 8], sizes = [32, 8], strides = [1, 1]} : vector<32x16xf32> to vector<32x8xf32>
    %c0_24 = arith.constant 0 : index
    %c0_25 = arith.constant 0 : index
    %27 = vector.load %arg3[%c0_24, %c0_25] : memref<32x8xf32, #tpu.memory_space<vmem>>, vector<32x8xf32>
    %28 = math.exp %26 : vector<32x8xf32>
    %29 = arith.mulf %27, %28 : vector<32x8xf32>
    %30 = arith.addf %25, %29 : vector<32x8xf32>
    %c0_26 = arith.constant 0 : index
    %c0_27 = arith.constant 0 : index
    %31 = vector.load %arg11[%c0_26, %c0_27] : memref<8x32xf32, #tpu.memory_space<vmem>>, vector<8x32xf32>
    %cst_28 = arith.constant dense<0.000000e+00> : vector<32x32xf32>
    %32 = tpu.matmul %30, %31, %cst_28 {dimension_numbers = #tpu.dot_dimension_numbers<[1], [0], [0], [1], [0, 0, 1, 1], [], []>} : vector<32x8xf32>, vector<8x32xf32>, vector<32x32xf32> -> vector<32x32xf32>
    %c0_29 = arith.constant 0 : index
    %c0_30 = arith.constant 0 : index
    %33 = vector.load %arg12[%c0_29, %c0_30] : memref<4x32xf32, #tpu.memory_space<vmem>>, vector<4x32xf32>
    %cst_31 = arith.constant dense<0.000000e+00> : vector<32x32xf32>
    %34 = tpu.matmul %1, %33, %cst_31 {dimension_numbers = #tpu.dot_dimension_numbers<[1], [0], [0], [1], [0, 0, 1, 1], [], []>} : vector<32x4xf32>, vector<4x32xf32>, vector<32x32xf32> -> vector<32x32xf32>
    %35 = arith.addf %32, %34 : vector<32x32xf32>
    %c0_32 = arith.constant 0 : index
    %c0_33 = arith.constant 0 : index
    %36 = vector.load %arg13[%c0_32, %c0_33] : memref<1x32xf32, #tpu.memory_space<vmem>>, vector<1x32xf32>
    %37 = vector.broadcast %36 : vector<1x32xf32> to vector<32x32xf32>
    %38 = arith.addf %35, %37 : vector<32x32xf32>
    %cst_34 = arith.constant 0.000000e+00 : f32
    %39 = vector.broadcast %cst_34 : f32 to vector<32x32xf32>
    %40 = arith.maximumf %38, %39 : vector<32x32xf32>
    %c0_35 = arith.constant 0 : index
    %c0_36 = arith.constant 0 : index
    %41 = vector.load %arg14[%c0_35, %c0_36] : memref<32x64xf32, #tpu.memory_space<vmem>>, vector<32x64xf32>
    %cst_37 = arith.constant dense<0.000000e+00> : vector<32x64xf32>
    %42 = tpu.matmul %40, %41, %cst_37 {dimension_numbers = #tpu.dot_dimension_numbers<[1], [0], [0], [1], [0, 0, 1, 1], [], []>} : vector<32x32xf32>, vector<32x64xf32>, vector<32x64xf32> -> vector<32x64xf32>
    %c0_38 = arith.constant 0 : index
    %c0_39 = arith.constant 0 : index
    %43 = vector.load %arg15[%c0_38, %c0_39] : memref<1x64xf32, #tpu.memory_space<vmem>>, vector<1x64xf32>
    %44 = vector.broadcast %43 : vector<1x64xf32> to vector<32x64xf32>
    %45 = arith.addf %42, %44 : vector<32x64xf32>
    %cst_40 = arith.constant 0.000000e+00 : f32
    %46 = vector.broadcast %cst_40 : f32 to vector<32x64xf32>
    %47 = arith.maximumf %45, %46 : vector<32x64xf32>
    %c0_41 = arith.constant 0 : index
    %c0_42 = arith.constant 0 : index
    %48 = vector.load %arg16[%c0_41, %c0_42] : memref<64x128xf32, #tpu.memory_space<vmem>>, vector<64x128xf32>
    %cst_43 = arith.constant dense<0.000000e+00> : vector<32x128xf32>
    %49 = tpu.matmul %47, %48, %cst_43 {dimension_numbers = #tpu.dot_dimension_numbers<[1], [0], [0], [1], [0, 0, 1, 1], [], []>} : vector<32x64xf32>, vector<64x128xf32>, vector<32x128xf32> -> vector<32x128xf32>
    %c0_44 = arith.constant 0 : index
    %c0_45 = arith.constant 0 : index
    %50 = vector.load %arg17[%c0_44, %c0_45] : memref<1x128xf32, #tpu.memory_space<vmem>>, vector<1x128xf32>
    %51 = vector.broadcast %50 : vector<1x128xf32> to vector<32x128xf32>
    %52 = arith.addf %49, %51 : vector<32x128xf32>
    %c0_46 = arith.constant 0 : index
    %c0_47 = arith.constant 0 : index
    %53 = vector.load %arg25[%c0_46, %c0_47] : memref<32x128xf32, #tpu.memory_space<vmem>>, vector<32x128xf32>
    tpu.vector_store %arg25[%c0_46, %c0_47], %52 {strides = array<i32>} : memref<32x128xf32, #tpu.memory_space<vmem>>, vector<32x128xf32>,
    %c0_48 = arith.constant 0 : index
    %c0_49 = arith.constant 0 : index
    %54 = vector.load %arg0[%c0_48, %c0_49] : memref<8x128xf32, #tpu.memory_space<vmem>>, vector<8x128xf32>
    %c0_50 = arith.constant 0 : index
    %c0_51 = arith.constant 0 : index
    %55 = vector.load %arg18[%c0_50, %c0_51] : memref<128x32xf32, #tpu.memory_space<vmem>>, vector<128x32xf32>
    %cst_52 = arith.constant dense<0.000000e+00> : vector<8x32xf32>
    %56 = tpu.matmul %54, %55, %cst_52 {dimension_numbers = #tpu.dot_dimension_numbers<[1], [0], [0], [1], [0, 0, 1, 1], [], []>} : vector<8x128xf32>, vector<128x32xf32>, vector<8x32xf32> -> vector<8x32xf32>
    %c0_53 = arith.constant 0 : index
    %c0_54 = arith.constant 0 : index
    %57 = vector.load %arg19[%c0_53, %c0_54] : memref<1x32xf32, #tpu.memory_space<vmem>>, vector<1x32xf32>
    %58 = vector.broadcast %57 : vector<1x32xf32> to vector<8x32xf32>
    %59 = arith.addf %56, %58 : vector<8x32xf32>
    %cst_55 = arith.constant 0.000000e+00 : f32
    %60 = vector.broadcast %cst_55 : f32 to vector<8x32xf32>
    %61 = arith.maximumf %59, %60 : vector<8x32xf32>
    %c0_56 = arith.constant 0 : index
    %c0_57 = arith.constant 0 : index
    %62 = vector.load %arg20[%c0_56, %c0_57] : memref<32x32xf32, #tpu.memory_space<vmem>>, vector<32x32xf32>
    %cst_58 = arith.constant dense<0.000000e+00> : vector<8x32xf32>
    %63 = tpu.matmul %61, %62, %cst_58 {dimension_numbers = #tpu.dot_dimension_numbers<[1], [0], [0], [1], [0, 0, 1, 1], [], []>} : vector<8x32xf32>, vector<32x32xf32>, vector<8x32xf32> -> vector<8x32xf32>
    %c0_59 = arith.constant 0 : index
    %c0_60 = arith.constant 0 : index
    %64 = vector.load %arg21[%c0_59, %c0_60] : memref<1x32xf32, #tpu.memory_space<vmem>>, vector<1x32xf32>
    %65 = vector.broadcast %64 : vector<1x32xf32> to vector<8x32xf32>
    %66 = arith.addf %63, %65 : vector<8x32xf32>
    %cst_61 = arith.constant 0.000000e+00 : f32
    %67 = vector.broadcast %cst_61 : f32 to vector<8x32xf32>
    %68 = arith.maximumf %66, %67 : vector<8x32xf32>
    %c0_62 = arith.constant 0 : index
    %c0_63 = arith.constant 0 : index
    %69 = vector.load %arg22[%c0_62, %c0_63] : memref<32x4xf32, #tpu.memory_space<vmem>>, vector<32x4xf32>
    %cst_64 = arith.constant dense<0.000000e+00> : vector<8x4xf32>
    %70 = tpu.matmul %68, %69, %cst_64 {dimension_numbers = #tpu.dot_dimension_numbers<[1], [0], [0], [1], [0, 0, 1, 1], [], []>} : vector<8x32xf32>, vector<32x4xf32>, vector<8x4xf32> -> vector<8x4xf32>
    %c0_65 = arith.constant 0 : index
    %c0_66 = arith.constant 0 : index
    %71 = vector.load %arg23[%c0_65, %c0_66] : memref<1x4xf32, #tpu.memory_space<vmem>>, vector<1x4xf32>
    %72 = vector.broadcast %71 : vector<1x4xf32> to vector<8x4xf32>
    %73 = arith.addf %70, %72 : vector<8x4xf32>
    %cst_67 = arith.constant dense<0xFF800000> : vector<8xf32>
    %74 = vector.multi_reduction <maximumf>, %73, %cst_67 [1] : vector<8x4xf32> to vector<8xf32>
    %75 = vector.shape_cast %74 : vector<8xf32> to vector<8x1xf32>
    %76 = vector.broadcast %75 : vector<8x1xf32> to vector<8x4xf32>
    %77 = arith.subf %73, %76 : vector<8x4xf32>
    %78 = math.exp %77 : vector<8x4xf32>
    %cst_68 = arith.constant dense<0.000000e+00> : vector<8xf32>
    %79 = vector.multi_reduction <add>, %78, %cst_68 [1] : vector<8x4xf32> to vector<8xf32>
    %80 = vector.shape_cast %79 : vector<8xf32> to vector<8x1xf32>
    %81 = vector.broadcast %80 : vector<8x1xf32> to vector<8x4xf32>
    %82 = arith.divf %78, %81 : vector<8x4xf32>
    %c0_69 = arith.constant 0 : index
    %c0_70 = arith.constant 0 : index
    %83 = vector.load %arg26[%c0_69, %c0_70] : memref<8x4xf32, #tpu.memory_space<vmem>>, vector<8x4xf32>
    tpu.vector_store %arg26[%c0_69, %c0_70], %82 {strides = array<i32>} : memref<8x4xf32, #tpu.memory_space<vmem>>, vector<8x4xf32>,
    %84 = vector.broadcast %75 : vector<8x1xf32> to vector<8x4xf32>
    %85 = arith.subf %73, %84 : vector<8x4xf32>
    %86 = math.log %80 : vector<8x1xf32>
    %87 = vector.broadcast %86 : vector<8x1xf32> to vector<8x4xf32>
    %88 = arith.subf %85, %87 : vector<8x4xf32>
    %c0_71 = arith.constant 0 : index
    %c0_72 = arith.constant 0 : index
    %89 = vector.load %arg27[%c0_71, %c0_72] : memref<8x4xf32, #tpu.memory_space<vmem>>, vector<8x4xf32>
    tpu.vector_store %arg27[%c0_71, %c0_72], %88 {strides = array<i32>} : memref<8x4xf32, #tpu.memory_space<vmem>>, vector<8x4xf32>,
    return
  }
}

</mosaic_0001>

<bundles_post_ra>
// kernel: tpu_custom_call.1
= control target key start
LH: loop header
LB: loop body
LE: loop exit
PB: predicated region body
PF: predicated region fallthrough
CT: control target
= control target key end

     0   :  { %s2205_s0 = inlined_call_operand.vmem [shape: f32[8,128], index: 0, kind: input, shape index: {}]   ;;  %s2206_s1 = inlined_call_operand.vmem [shape: f32[32,128], index: 1, kind: input, shape index: {}]   ;;  %s2207_s2 = inlined_call_operand.vmem [shape: f32[32,4], index: 2, kind: input, shape index: {}]   ;;  %s2208_s3 = inlined_call_operand.vmem [shape: f32[32,8], index: 3, kind: input, shape index: {}]   ;;  %s2209_s4 = inlined_call_operand.vmem [shape: f32[128,64], index: 4, kind: input, shape index: {}]   ;;  %s2210_s5 = inlined_call_operand.vmem [shape: f32[4,64], index: 5, kind: input, shape index: {}]   ;;  %s2211_s6 = inlined_call_operand.vmem [shape: f32[1,64], index: 6, kind: input, shape index: {}]   ;;  %s2212_s7 = inlined_call_operand.vmem [shape: f32[64,32], index: 7, kind: input, shape index: {}]   ;;  %s2213_s8 = inlined_call_operand.vmem [shape: f32[1,32], index: 8, kind: input, shape index: {}]   ;;  %s2214_s9 = inlined_call_operand.vmem [shape: f32[32,16], index: 9, kind: input, shape index: {}]   ;;  %s2215_s10 = inlined_call_operand.vmem [shape: f32[1,16], index: 10, kind: input, shape index: {}]   ;;  %s2216_s11 = inlined_call_operand.vmem [shape: f32[8,32], index: 11, kind: input, shape index: {}]   ;;  %s2217_s12 = inlined_call_operand.vmem [shape: f32[4,32], index: 12, kind: input, shape index: {}]   ;;  %s2218_s13 = inlined_call_operand.vmem [shape: f32[1,32], index: 13, kind: input, shape index: {}]   ;;  %s2219_s14 = inlined_call_operand.vmem [shape: f32[32,64], index: 14, kind: input, shape index: {}]   ;;  %s2220_s15 = inlined_call_operand.vmem [shape: f32[1,64], index: 15, kind: input, shape index: {}]   ;;  %s2221_s16 = inlined_call_operand.vmem [shape: f32[64,128], index: 16, kind: input, shape index: {}]   ;;  %s2222_s17 = inlined_call_operand.vmem [shape: f32[1,128], index: 17, kind: input, shape index: {}]   ;;  %s2223_s18 = inlined_call_operand.vmem [shape: f32[128,32], index: 18, kind: input, shape index: {}]   ;;  %s2224_s19 = inlined_call_operand.vmem [shape: f32[1,32], index: 19, kind: input, shape index: {}]   ;;  %s2225_s20 = inlined_call_operand.vmem [shape: f32[32,32], index: 20, kind: input, shape index: {}]   ;;  %s2226_s21 = inlined_call_operand.vmem [shape: f32[1,32], index: 21, kind: input, shape index: {}]   ;;  %s2227_s22 = inlined_call_operand.vmem [shape: f32[32,4], index: 22, kind: input, shape index: {}]   ;;  %s2228_s23 = inlined_call_operand.vmem [shape: f32[1,4], index: 23, kind: input, shape index: {}]   ;;  %s2229_s24 = inlined_call_operand.vmem [shape: f32[32,16], index: 24, kind: output, shape index: {0}]   ;;  %s2230_s25 = inlined_call_operand.hbm [shape: f32[32,128], index: 25, kind: output, shape index: {1}]   ;;  %s2231_s26 = inlined_call_operand.vmem [shape: f32[8,4], index: 26, kind: output, shape index: {2}]   ;;  %s2232_s27 = inlined_call_operand.vmem [shape: f32[8,4], index: 27, kind: output, shape index: {3}]  }
   0x1   :  { %2239 = sst [smem:[#allocation5_spill]] %s2205_s0 }
   0x2   :  { %2240 = sst [smem:[#allocation6_spill]] %s2206_s1 }
   0x3   :  { %2241 = sst [smem:[#allocation7_spill]] %s2207_s2 }
   0x4   :  { %2242 = sst [smem:[#allocation8_spill]] %s2208_s3 }
   0x5   :  { %2243 = sst [smem:[#allocation9_spill]] %s2209_s4 }
   0x6   :  { %2244 = sst [smem:[#allocation10_spill]] %s2210_s5 }
   0x7   :  { %2245 = sst [smem:[#allocation11_spill]] %s2211_s6 }
   0x8   :  { %2246 = sst [smem:[#allocation12_spill]] %s2212_s7 }
   0x9   :  { %2247 = sst [smem:[#allocation13_spill]] %s2213_s8 }
   0xa   :  { %2248 = sst [smem:[#allocation14_spill]] %s2214_s9 }
   0xb   :  { %2249 = sst [smem:[#allocation15_spill]] %s2215_s10 }
   0xc   :  { %2250 = sst [smem:[#allocation16_spill]] %s2216_s11 }
   0xd   :  { %s2251_s8 = sld [smem:[#allocation9_spill]]  ;;  %vm120_vm0 = vcmask 1043456   ;;  %vm107_vm1 = vcmask 31744  }
   0xe   :  { %s2252_s6 = sld [smem:[#allocation10_spill]] }
   0xf   :  { %s2253_s3 = sld [smem:[#allocation7_spill]] }
  0x10   :  { %s2254_s0 = sld [smem:[#allocation6_spill]] }
  0x11   :  { %s2255_s7 = sld [smem:[#allocation12_spill]] }
  0x13   :  { %v105_v0 = vld [vmem:[%s2251_s8 + $0x78] sm:$0xff]  ;;  %v104_v1 = vld [vmem:[%s2251_s8 + $0x70] sm:$0xff]  ;;  %v103_v2 = vld [vmem:[%s2251_s8 + $0x68] sm:$0xff] }
  0x14   :  { %1466 = vmatprep.subr.mxu1 %v105_v0  ;;  %v102_v3 = vld [vmem:[%s2251_s8 + $0x60] sm:$0xff]  ;;  %v101_v7 = vld [vmem:[%s2251_s8 + $0x58] sm:$0xff]  ;;  %v100_v10 = vld [vmem:[%s2251_s8 + $0x50] sm:$0xff] }
  0x15   :  { %1467 = vmatpush3.msra.mxu1 %v105_v0  ;;  %v106_v4 = vld [vmem:[%s2252_s6] sm:$0xf]  ;;  %v1861_v6 = vld [vmem:[%s2253_s3 + $0x8] sm:$0xff]  ;;  %v1875_v9 = vld [vmem:[%s2253_s3 + $0x10] sm:$0xff] }
  0x16   :  { %1468 = vmatprep.subr.mxu1 %v104_v1  ;;  %1458 = vmatprep.subr.msk.mxu0 %vm120_vm0, %v106_v4  ;;  %v1856_v5 = vld [vmem:[%s2253_s3] sm:$0xff]  ;;  %v1888_v12 = vld [vmem:[%s2253_s3 + $0x18] sm:$0xff] }
  0x17   :  { %1469 = vmatpush3.msra.mxu1 %v104_v1  ;;  %1459 = vmatpush3.msk.msra.mxu0 %vm120_vm0, %v106_v4  ;;  %v82_v8 = vld [vmem:[%s2254_s0] sm:$0xff]  ;;  %v316_v11 = vld [vmem:[%s2255_s7 + $0x38] sm:$0xff] }
  0x18   :  { %1470 = vmatprep.subr.mxu1 %v103_v2  ;;  %1460 = vmatprep.mubr.msk.f32.mxu0 %vm107_vm1, %v1856_v5 }
  0x19   :  { %1471 = vmatpush3.msra.mxu1 %v103_v2  ;;  %1461 = vmatmul.mubr.msk.f32.vlgmr.msra.gmra.mxu0 %vm107_vm1, %v1861_v6 }
  0x1a   :  { %1472 = vmatprep.subr.mxu1 %v102_v3  ;;  %1498 = vmatprep.mubr.f32.mxu1 %v82_v8 }
  0x1b   :  { %1473 = vmatpush3.msra.mxu1 %v102_v3 }
  0x1c   :  { %1474 = vmatprep.subr.mxu1 %v101_v7 }
  0x1d   :  { %33 = vsyncpa [#allocation3], 0  ;;  %1475 = vmatpush3.msra.mxu1 %v101_v7  ;;  %v99_v13 = vld [vmem:[%s2251_s8 + $0x48] sm:$0xff]  ;;  %1463 = vmatprep.mubr.msk.f32.mxu0 %vm107_vm1, %v1875_v9  ;;  %v315_v14 = vld [vmem:[%s2255_s7 + $0x30] sm:$0xff]  ;;  %s2257_s3 = sld [smem:[#allocation11_spill]]  ;;  %vm324_vm2 = vcmask 523264  }
  0x1e   :  { %1476 = vmatprep.subr.mxu1 %v100_v10  ;;  %1504 = vmatprep.subr.mxu0 %v316_v11  ;;  %v98_v15 = vld [vmem:[%s2251_s8 + $0x40] sm:$0xff]  ;;  %v97_v16 = vld [vmem:[%s2251_s8 + $0x38] sm:$0xff]  ;;  %v96_v17 = vld [vmem:[%s2251_s8 + $0x30] sm:$0xff]  ;;  %s2258_s5 = sld [smem:[#allocation13_spill]]  ;;  %vm437_vm3 = vcmask 261120   ;;  %vm535_vm4 = vcmask 130048  }
  0x1f   :  { %1477 = vmatpush3.msra.mxu1 %v100_v10  ;;  %1464 = vmatmul.mubr.msk.f32.gmra.mxu0 %vm107_vm1, %v1888_v12  ;;  %v95_v18 = vld [vmem:[%s2251_s8 + $0x28] sm:$0xff]  ;;  %v94_v19 = vld [vmem:[%s2251_s8 + $0x20] sm:$0xff]  ;;  %v93_v20 = vld [vmem:[%s2251_s8 + $0x18] sm:$0xff]  ;;  %s2259_s1 = sld [smem:[#allocation16_spill]]  ;;  %s1691_s28 = smov 120   ;;  %vm666_vm5 = vcmask 64512  }
  0x20   :  { %1478 = vmatprep.subr.mxu1 %v99_v13  ;;  %1505 = vmatpush3.msra.mxu0 %v316_v11  ;;  %v92_v21 = vld [vmem:[%s2251_s8 + $0x10] sm:$0xff]  ;;  %v91_v22 = vld [vmem:[%s2251_s8 + $0x8] sm:$0xff]  ;;  %v90_v23 = vld [vmem:[%s2251_s8] sm:$0xff]  ;;  %s2256_s8 = sld [smem:[#allocation14_spill]]  ;;  %vm1693_vm6 = vmmov 0  }
  0x21   :  { %1479 = vmatpush3.msra.mxu1 %v99_v13  ;;  %1506 = vmatprep.subr.mxu0 %v315_v14  ;;  %v83_v24 = vld [vmem:[%s2254_s0 + $0x8] sm:$0xff]  ;;  %v84_v25 = vld [vmem:[%s2254_s0 + $0x10] sm:$0xff]  ;;  %v85_v26 = vld [vmem:[%s2254_s0 + $0x18] sm:$0xff]  ;;  %s2261_s29 = sld [smem:[#allocation8_spill]] }
  0x22   :  { %1480 = vmatprep.subr.mxu1 %v98_v15  ;;  %1507 = vmatpush3.msra.mxu0 %v315_v14  ;;  %v314_v27 = vld [vmem:[%s2255_s7 + $0x28] sm:$0xff]  ;;  %v313_v28 = vld [vmem:[%s2255_s7 + $0x20] sm:$0xff]  ;;  %v312_v29 = vld [vmem:[%s2255_s7 + $0x18] sm:$0xff] }
  0x23   :  { %1481 = vmatpush3.msra.mxu1 %v98_v15  ;;  %1508 = vmatprep.subr.mxu0 %v314_v27  ;;  %v311_v30 = vld [vmem:[%s2255_s7 + $0x10] sm:$0xff]  ;;  %v310_v31 = vld [vmem:[%s2255_s7 + $0x8] sm:$0xff]  ;;  %v309_v32 = vld [vmem:[%s2255_s7] sm:$0xff]  ;;  %s2260_s7 = sld [smem:[#allocation15_spill]] }
  0x24   :  { %1482 = vmatprep.subr.mxu1 %v97_v16  ;;  %1509 = vmatpush3.msra.mxu0 %v314_v27  ;;  %v1320_v39 = vld [vmem:[%s2257_s3] ss:$0 sm:$0xff] }
  0x25   :  { %1483 = vmatpush3.msra.mxu1 %v97_v16  ;;  %1510 = vmatprep.subr.mxu0 %v313_v28  ;;  %v1321_v58 = vld [vmem:[%s2258_s5] ss:$0 sm:$0xff] }
  0x26   :  { %1484 = vmatprep.subr.mxu1 %v96_v17  ;;  %1511 = vmatpush3.msra.mxu0 %v313_v28  ;;  %v429_v33 = vld [vmem:[%s2256_s8 + $0x18] sm:$0xff]  ;;  %v428_v55 = vld [vmem:[%s2256_s8 + $0x10] sm:$0xff]  ;;  %v427_v56 = vld [vmem:[%s2256_s8 + $0x8] sm:$0xff] }
  0x27   :  { %1485 = vmatpush3.msra.mxu1 %v96_v17  ;;  %1512 = vmatprep.subr.mxu0 %v312_v29  ;;  %v426_v57 = vld [vmem:[%s2256_s8] sm:$0xff] }
  0x28   :  { %1486 = vmatprep.subr.mxu1 %v95_v18  ;;  %1513 = vmatpush3.msra.mxu0 %v312_v29  ;;  %v577_v10 = vld [vmem:[%s2217_s12] sm:$0xf]  ;;  %v542_v29 = vld [vmem:[%s2261_s29 + $0x10] sm:$0xff] }
  0x29   :  { %1487 = vmatpush3.msra.mxu1 %v95_v18  ;;  %1514 = vmatprep.subr.mxu0 %v311_v30  ;;  %v576_v11 = vld [vmem:[%s2259_s1] sm:$0xff] }
  0x2a   :  { %1488 = vmatprep.subr.mxu1 %v94_v19  ;;  %1515 = vmatpush3.msra.mxu0 %v311_v30  ;;  %v541_v30 = vld [vmem:[%s2261_s29 + $0x8] sm:$0xff] }
  0x2b   :  { %1489 = vmatpush3.msra.mxu1 %v94_v19  ;;  %1516 = vmatprep.subr.mxu0 %v310_v31 }
  0x2c   :  { %1490 = vmatprep.subr.mxu1 %v93_v20  ;;  %1517 = vmatpush3.msra.mxu0 %v310_v31 }
  0x2d   :  { %1491 = vmatpush3.msra.mxu1 %v93_v20  ;;  %1518 = vmatprep.subr.mxu0 %v309_v32 }
  0x2e   :  { %1492 = vmatprep.subr.mxu1 %v92_v21  ;;  %1519 = vmatpush3.msra.mxu0 %v309_v32 }
  0x2f   :  { %1493 = vmatpush3.msra.mxu1 %v92_v21  ;;  %1526 = vmatprep.subr.mxu0 %v429_v33 }
  0x30   :  { %1494 = vmatprep.subr.mxu1 %v91_v22 }
  0x31   :  { %1495 = vmatpush3.msra.mxu1 %v91_v22 }
  0x32   :  { %1496 = vmatprep.subr.mxu1 %v90_v23 }
  0x33   :  { %1497 = vmatpush3.msra.mxu1 %v90_v23 }
  0x34   :  { %1499 = vmatmul.mubr.f32.vlgmr.msra.gmra.mxu1 %v83_v24  ;;  %1548 = vmatprep.subr.mxu1 %v576_v11 }
  0x35   :  { %1501 = vmatprep.mubr.f32.mxu1 %v84_v25  ;;  %1549 = vmatpush3.msra.mxu1 %v576_v11 }
  0x38   :  { %1502 = vmatmul.mubr.f32.gmra.mxu1 %v85_v26  ;;  %v540_v26 = vld [vmem:[%s2261_s29] sm:$0xff] }
  0xd9   :  { %v1462_v34 = vpop.f32.mrf.mxu0 }
  0xdb   :  { %v190_v35 = vpop.f32.mrf.mxu0 }
  0xdf   :  { %v1465_v37 = vpop.f32.mrf.mxu0 }
  0xe1   :  { %v200_v44 = vpop.f32.mrf.mxu0 }
  0xf4   :  { %v1500_v36 = vpop.f32.mrf.mxu1 }
  0xf5   :  { %v281_v38 = vadd.f32 %v1500_v36, %v1462_v34  ;;  %v543_v36 = vld [vmem:[%s2261_s29 + $0x18] sm:$0xff] }
  0xf6   :  { %v275_v40 = vpop.f32.mrf.mxu1 }
  0xf7   :  { %v276_v41 = vadd.f32 %v275_v40, %v190_v35  ;;  %v302_v42 = vadd.f32 %v1320_v39, %v281_v38 }
  0xf8   :  { %v1503_v43 = vpop.f32.mrf.mxu1 }
  0xf9   :  { %v301_v45 = vadd.f32 %v1320_v39, %v276_v41  ;;  %v291_v46 = vadd.f32 %v1503_v43, %v1465_v37  ;;  %v306_v51 = vmax.f32 %v302_v42, 0.0  ;;  %v782_v42 = vld [vmem:[%s2219_s14 + $0x18] sm:$0xff]  ;;  %v781_v43 = vld [vmem:[%s2219_s14 + $0x10] sm:$0xff] }
  0xfa   :  { %v285_v47 = vpop.f32.mrf.mxu1 }
  0xfb   :  { %v305_v48 = vmax.f32 %v301_v45, 0.0  ;;  %v304_v49 = vadd.f32 %v1320_v39, %v291_v46  ;;  %v286_v50 = vadd.f32 %v285_v47, %v200_v44  ;;  %v780_v44 = vld [vmem:[%s2219_s14 + $0x8] sm:$0xff]  ;;  %v779_v45 = vld [vmem:[%s2219_s14] sm:$0xff]  ;;  %v1692_v46 = vmov 0.0   ;;  %v898_v47 = vld [vmem:[%s2221_s16 + $0x38] sm:$0xff]  ;;  %s2262_s14 = sld [smem:[#allocation5_spill]] }
  0xfc   :  { %1570 = vmatprep.subr.mxu1 %v898_v47 }
  0xfd   :  { %v303_v52 = vadd.f32 %v1320_v39, %v286_v50  ;;  %1520 = vmatprep.mubr.msk.f32.mxu0 %vm324_vm2, %v305_v48  ;;  %v308_v53 = vmax.f32 %v304_v49, 0.0  ;;  %v897_v48 = vld [vmem:[%s2221_s16 + $0x30] sm:$0xff]  ;;  %v896_v49 = vld [vmem:[%s2221_s16 + $0x28] sm:$0xff]  ;;  %v895_v50 = vld [vmem:[%s2221_s16 + $0x20] sm:$0xff] }
  0xfe   :  { %1521 = vmatmul.mubr.msk.f32.vlgmr.msra.gmra.mxu0 %vm324_vm2, %v306_v51 }
  0xff   :  { %v307_v54 = vmax.f32 %v303_v52, 0.0  ;;  %1527 = vmatpush3.msra.mxu0 %v429_v33 }
 0x100   :  { %1528 = vmatprep.subr.mxu0 %v428_v55 }
 0x101   :  { %1523 = vmatprep.mubr.msk.f32.mxu0 %vm324_vm2, %v307_v54  ;;  %1529 = vmatpush3.msra.mxu0 %v428_v55 }
 0x102   :  { %1524 = vmatmul.mubr.msk.f32.gmra.mxu0 %vm324_vm2, %v308_v53  ;;  %1530 = vmatprep.subr.mxu0 %v427_v56 }
 0x103   :  { %1531 = vmatpush3.msra.mxu0 %v427_v56  ;;  %v1340_v56 = vld [vmem:[%s2218_s13] ss:$0 sm:$0xff] }
 0x104   :  { %1532 = vmatprep.subr.mxu0 %v426_v57 }
 0x105   :  { %1533 = vmatpush3.msra.mxu0 %v426_v57 }
 0x106   :  { %1540 = vmatprep.subr.msk.mxu0 %vm120_vm0, %v577_v10 }
 0x1be   :  { %v1522_v59 = vpop.f32.mrf.mxu0 }
 0x1bf   :  { %v409_v60 = vadd.f32 %v1522_v59, %v1321_v58 }
 0x1c0   :  { %v403_v61 = vpop.f32.mrf.mxu0 }
 0x1c1   :  { %v404_v62 = vadd.f32 %v1321_v58, %v403_v61  ;;  %v423_v2 = vmax.f32 %v409_v60, 0.0 }
 0x1c2   :  { %v1525_v63 = vpop.f32.mrf.mxu0 }
 0x1c3   :  { %v422_v0 = vmax.f32 %v404_v62, 0.0  ;;  %v419_v1 = vadd.f32 %v1525_v63, %v1321_v58 }
 0x1c4   :  { %v413_v3 = vpop.f32.mrf.mxu0 }
 0x1c5   :  { %v414_v4 = vadd.f32 %v1321_v58, %v413_v3  ;;  %1534 = vmatprep.mubr.msk.f32.mxu0 %vm437_vm3, %v422_v0  ;;  %v425_v7 = vmax.f32 %v419_v1, 0.0 }
 0x1c6   :  { %1535 = vmatmul.mubr.msk.f32.vlgmr.msra.gmra.mxu0 %vm437_vm3, %v423_v2 }
 0x1c7   :  { %v424_v8 = vmax.f32 %v414_v4, 0.0  ;;  %1541 = vmatpush3.msk.msra.mxu0 %vm120_vm0, %v577_v10  ;;  %v1022_v10 = vld [vmem:[%s2223_s18 + $0x70] sm:$0xff] }
 0x1c8   :  { %1556 = vmatprep.subr.mxu0 %v782_v42 }
 0x1c9   :  { %1537 = vmatprep.mubr.msk.f32.mxu0 %vm437_vm3, %v424_v8 }
 0x1ca   :  { %1538 = vmatmul.mubr.msk.f32.gmra.mxu0 %vm437_vm3, %v425_v7  ;;  %v1023_v7 = vld [vmem:[%s2223_s18 + $0x78] sm:$0xff] }
 0x1cb   :  { %1542 = vmatprep.mubr.msk.f32.mxu0 %vm107_vm1, %v1856_v5  ;;  %v1326_v5 = vld [vmem:[%s2260_s7] ss:$0 sm:$0xff] }
 0x1ce   :  { %1543 = vmatmul.mubr.msk.f32.vlgmr.msra.gmra.mxu0 %vm107_vm1, %v1861_v6 }
 0x1cf   :  { %1545 = vmatprep.mubr.msk.f32.mxu0 %vm107_vm1, %v1875_v9  ;;  %1557 = vmatpush3.msra.mxu0 %v782_v42 }
 0x1d0   :  { %1558 = vmatprep.subr.mxu0 %v781_v43 }
 0x1d1   :  { %1559 = vmatpush3.msra.mxu0 %v781_v43 }
 0x1d2   :  { %1546 = vmatmul.mubr.msk.f32.gmra.mxu0 %vm107_vm1, %v1888_v12  ;;  %1560 = vmatprep.subr.mxu0 %v780_v44 }
 0x1d3   :  { %1561 = vmatpush3.msra.mxu0 %v780_v44  ;;  %v1103_v44 = vld [vmem:[%s2225_s20 + $0x8] sm:$0xff] }
 0x1d4   :  { %1562 = vmatprep.subr.mxu0 %v779_v45 }
 0x1d5   :  { %1563 = vmatpush3.msra.mxu0 %v779_v45  ;;  %v1102_v45 = vld [vmem:[%s2225_s20] sm:$0xff] }
 0x1d6   :  { %1592 = vmatprep.subr.mxu0 %v1692_v46 }
 0x286   :  { %v1536_v13 = vpop.f32.mrf.mxu0 }
 0x287   :  { %v522_v14 = vadd.f32 %v1536_v13, %v1326_v5  ;;  %v1021_v13 = vld [vmem:[%s2223_s18 + $0x68] sm:$0xff] }
 0x288   :  { %v516_v15 = vpop.f32.mrf.mxu0 }
 0x289   :  { %537 = vst.msk [vmem:[%s2229_s24 + $0x8] sm:$0xff] %vm535_vm4, %v522_v14  ;;  %v517_v16 = vadd.f32 %v1326_v5, %v516_v15  ;;  %v546_v17 = vmul.f32 1.442695, %v522_v14  ;;  %v1019_v15 = vld [vmem:[%s2223_s18 + $0x58] sm:$0xff] }
 0x28a   :  { %v1539_v6 = vpop.f32.mrf.mxu0 }
 0x28b   :  { %536 = vst.msk [vmem:[%s2229_s24] sm:$0xff] %vm535_vm4, %v517_v16  ;;  %v544_v9 = vmul.f32 1.442695, %v517_v16  ;;  %v532_v12 = vadd.f32 %v1539_v6, %v1326_v5  ;;  %v1017_v6 = vld [vmem:[%s2223_s18 + $0x48] sm:$0xff] }
 0x28c   :  { %v526_v18 = vpop.f32.mrf.mxu0 }
 0x28d   :  { %1655 = vpow2.f32 %v544_v9  ;;  %539 = vst.msk [vmem:[%s2229_s24 + $0x18] sm:$0xff] %vm535_vm4, %v532_v12  ;;  %v527_v19 = vadd.f32 %v1326_v5, %v526_v18  ;;  %v550_v20 = vmul.f32 1.442695, %v532_v12  ;;  %v1016_v9 = vld [vmem:[%s2223_s18 + $0x40] sm:$0xff]  ;;  %v1013_v18 = vld [vmem:[%s2223_s18 + $0x28] sm:$0xff] }
 0x28e   :  { %1657 = vpow2.f32 %v546_v17  ;;  %v1544_v51 = vpop.f32.mrf.mxu0  ;;  %v1014_v17 = vld [vmem:[%s2223_s18 + $0x30] sm:$0xff] }
 0x28f   :  { %538 = vst.msk [vmem:[%s2229_s24 + $0x10] sm:$0xff] %vm535_vm4, %v527_v19  ;;  %v548_v21 = vmul.f32 1.442695, %v527_v19 }
 0x290   :  { %v647_v52 = vpop.f32.mrf.mxu0 }
 0x291   :  { %1659 = vpow2.f32 %v548_v21  ;;  %v1010_v21 = vld [vmem:[%s2223_s18 + $0x10] sm:$0xff] }
 0x292   :  { %1661 = vpow2.f32 %v550_v20  ;;  %v1547_v54 = vpop.f32.mrf.mxu0  ;;  %v1011_v20 = vld [vmem:[%s2223_s18 + $0x18] sm:$0xff] }
 0x294   :  { %v657_v61 = vpop.f32.mrf.mxu0 }
 0x29a   :  { %v1656_v22 = vpop.eup %1655 }
 0x29b   :  { %556 = vrot.lane.b32.xlu0 %v1656_v22, %s1691_s28  ;;  %v1658_v23 = vpop.eup %1657  ;;  %v1009_v22 = vld [vmem:[%s2223_s18 + $0x8] sm:$0xff] }
 0x29e   :  { %v1660_v24 = vpop.eup %1659 }
 0x29f   :  { %560 = vrot.lane.b32.xlu1 %v1660_v24, %s1691_s28  ;;  %558 = vrot.lane.b32.xlu0 %v1658_v23, %s1691_s28  ;;  %v1662_v25 = vpop.eup %1661  ;;  %v1008_v23 = vld [vmem:[%s2223_s18] sm:$0xff] }
 0x2a0   :  { %v1007_v24 = vld [vmem:[%s2262_s14] sm:$0xff] }
 0x2a3   :  { %562 = vrot.lane.b32.xlu1 %v1662_v25, %s1691_s28  ;;  %v894_v25 = vld [vmem:[%s2221_s16 + $0x18] sm:$0xff] }
 0x30d   :  { %v557_v27 = vpop.permute.xlu0 %556 }
 0x30e   :  { %v568_v28 = vmul.f32 %v557_v27, %v540_v26  ;;  %v893_v26 = vld [vmem:[%s2221_s16 + $0x10] sm:$0xff]  ;;  %v892_v27 = vld [vmem:[%s2221_s16 + $0x8] sm:$0xff] }
 0x310   :  { %v572_v31 = vadd.f32 %v568_v28, %v517_v16  ;;  %v1018_v16 = vld [vmem:[%s2223_s18 + $0x50] sm:$0xff]  ;;  %v891_v28 = vld [vmem:[%s2221_s16] sm:$0xff] }
 0x311   :  { %v561_v32 = vpop.permute.xlu1 %560  ;;  %v559_v33 = vpop.permute.xlu0 %558 }
 0x312   :  { %v570_v34 = vmul.f32 %v561_v32, %v542_v29  ;;  %v569_v35 = vmul.f32 %v559_v33, %v541_v30  ;;  %1550 = vmatprep.mubr.msk.f32.mxu1 %vm666_vm5, %v572_v31  ;;  %v1341_v29 = vld [vmem:[%s2220_s15] ss:$0 sm:$0xff] }
 0x314   :  { %v574_v37 = vadd.f32 %v570_v34, %v527_v19  ;;  %v573_v38 = vadd.f32 %v569_v35, %v522_v14  ;;  %v1020_v14 = vld [vmem:[%s2223_s18 + $0x60] sm:$0xff] }
 0x315   :  { %v563_v39 = vpop.permute.xlu1 %562  ;;  %v1012_v19 = vld [vmem:[%s2223_s18 + $0x20] sm:$0xff] }
 0x316   :  { %v571_v40 = vmul.f32 %v563_v39, %v543_v36  ;;  %1551 = vmatmul.mubr.msk.f32.vlgmr.msra.gmra.mxu1 %vm666_vm5, %v573_v38  ;;  %v1105_v39 = vld [vmem:[%s2225_s20 + $0x18] sm:$0xff] }
 0x317   :  { %1553 = vmatprep.mubr.msk.f32.mxu1 %vm666_vm5, %v574_v37  ;;  %1571 = vmatpush3.msra.mxu1 %v898_v47  ;;  %v1351_v47 = vld [vmem:[%s2224_s19] ss:$0 sm:$0xff] }
 0x318   :  { %v575_v41 = vadd.f32 %v571_v40, %v532_v12  ;;  %1572 = vmatprep.subr.mxu1 %v897_v48  ;;  %v1015_v12 = vld [vmem:[%s2223_s18 + $0x38] sm:$0xff] }
 0x319   :  { %1573 = vmatpush3.msra.mxu1 %v897_v48 }
 0x31a   :  { %1554 = vmatmul.mubr.msk.f32.gmra.mxu1 %vm666_vm5, %v575_v41  ;;  %1574 = vmatprep.subr.mxu1 %v896_v49  ;;  %v1104_v41 = vld [vmem:[%s2225_s20 + $0x10] sm:$0xff] }
 0x31b   :  { %1575 = vmatpush3.msra.mxu1 %v896_v49 }
 0x31c   :  { %1576 = vmatprep.subr.mxu1 %v895_v50 }
 0x31d   :  { %1577 = vmatpush3.msra.mxu1 %v895_v50 }
 0x31e   :  { %1578 = vmatprep.subr.mxu1 %v894_v25 }
 0x31f   :  { %1579 = vmatpush3.msra.mxu1 %v894_v25 }
 0x320   :  { %1580 = vmatprep.subr.mxu1 %v893_v26 }
 0x321   :  { %1581 = vmatpush3.msra.mxu1 %v893_v26 }
 0x322   :  { %1582 = vmatprep.subr.mxu1 %v892_v27 }
 0x323   :  { %1583 = vmatpush3.msra.mxu1 %v892_v27 }
 0x324   :  { %1584 = vmatprep.subr.mxu1 %v891_v28 }
 0x325   :  { %1585 = vmatpush3.msra.mxu1 %v891_v28 }
 0x326   :  { %1627 = vmatprep.subr.mxu1 %v1692_v46 }
 0x3d6   :  { %v1552_v53 = vpop.f32.mrf.mxu1 }
 0x3d7   :  { %v751_v55 = vadd.f32 %v1552_v53, %v1544_v51  ;;  %v1189_v53 = vld [vmem:[%s2227_s22 + $0x10] sm:$0xff] }
 0x3d8   :  { %v745_v57 = vpop.f32.mrf.mxu1 }
 0x3d9   :  { %v746_v58 = vadd.f32 %v745_v57, %v647_v52  ;;  %v772_v59 = vadd.f32 %v1340_v56, %v751_v55  ;;  %v1190_v52 = vld [vmem:[%s2227_s22 + $0x18] sm:$0xff]  ;;  %v1187_v55 = vld [vmem:[%s2227_s22] sm:$0xff] }
 0x3da   :  { %v1555_v60 = vpop.f32.mrf.mxu1 }
 0x3db   :  { %v771_v62 = vadd.f32 %v1340_v56, %v746_v58  ;;  %v761_v63 = vadd.f32 %v1555_v60, %v1547_v54  ;;  %v776_v3 = vmax.f32 %v772_v59, 0.0  ;;  %v1188_v54 = vld [vmem:[%s2227_s22 + $0x8] sm:$0xff] }
 0x3dc   :  { %v755_v0 = vpop.f32.mrf.mxu1 }
 0x3dd   :  { %v775_v1 = vmax.f32 %v771_v62, 0.0  ;;  %v756_v2 = vadd.f32 %v755_v0, %v657_v61  ;;  %v774_v4 = vadd.f32 %v1340_v56, %v761_v63  ;;  %v1352_v0 = vld [vmem:[%s2226_s21] ss:$0 sm:$0xff]  ;;  %s1694_s21 = smov [#allocation2]  }
 0x3de   :  { %s1294_s4 = sshll.u32 %s1694_s21, 4  ;;  %s1295_s4 = int_to_ptr.vmem [resolvable:$true] %s1294_s4 }
 0x3df   :  { %v773_v8 = vadd.f32 %v1340_v56, %v756_v2  ;;  %1564 = vmatprep.mubr.msk.f32.mxu0 %vm437_vm3, %v775_v1  ;;  %v778_v5 = vmax.f32 %v774_v4, 0.0  ;;  %v1346_v56 = vld [vmem:[%s2222_s17] ss:$0 sm:$0xff]  ;;  %s1669_s30 = scalar_lea.vmem %s1295_s4, 512  ;;  %p1674_p1 = scmp.lt.s32.totalorder %s1295_s4, %s1295_s4 }
 0x3e0   :  { %1565 = vmatmul.mubr.msk.f32.vlgmr.msra.gmra.mxu0 %vm437_vm3, %v776_v3  ;;  %p1670_p0 = scmp.ne.s32.totalorder %s1295_s4, %s1669_s30  ;;  %p1675_p2 = scmp.lt.s32.totalorder %s1669_s30, %s1669_s30 }
 0x3e1   :  { %v777_v11 = vmax.f32 %v773_v8, 0.0  ;;  %1593 = vmatpush3.msra.mxu0 %v1023_v7  ;;  %v1354_v7 = vld [vmem:[%s2228_s23] ss:$0 sm:$0xff] }
 0x3e2   :  { %1594 = vmatprep.subr.mxu0 %v1692_v46  ;;  %p1676_p3 = por %p1675_p2, %p1674_p1 }
 0x3e3   :  { %1595 = vmatpush3.msra.mxu0 %v1022_v10  ;;  %1567 = vmatprep.mubr.msk.f32.mxu0 %vm437_vm3, %v777_v11 }
 0x3e4   :  { %1596 = vmatprep.subr.mxu0 %v1692_v46  ;;  %1568 = vmatmul.mubr.msk.f32.gmra.mxu0 %vm437_vm3, %v778_v5  ;;  %p1677_p4 = pnand %p1676_p3, %p1670_p0 }
 0x3e5   :  { %1597 = vmatpush3.msra.mxu0 %v1021_v13  ;;  %1624 = vmatprep.mubr.msk.f32.mxu0 %vm1693_vm6, %v1692_v46 }
 0x3e6   :  { %1598 = vmatprep.subr.mxu0 %v1692_v46 }
 0x3e7   :  { %1599 = vmatpush3.msra.mxu0 %v1020_v14 }
 0x3e8   :  { %1600 = vmatprep.subr.mxu0 %v1692_v46 }
 0x3e9   :  { %1601 = vmatpush3.msra.mxu0 %v1019_v15 }
 0x3ea   :  { %1602 = vmatprep.subr.mxu0 %v1692_v46 }
 0x3eb   :  { %1603 = vmatpush3.msra.mxu0 %v1018_v16 }
 0x3ec   :  { %1604 = vmatprep.subr.mxu0 %v1692_v46 }
 0x3ed   :  { %1605 = vmatpush3.msra.mxu0 %v1017_v6 }
 0x3ee   :  { %1606 = vmatprep.subr.mxu0 %v1692_v46 }
 0x3ef   :  { %1607 = vmatpush3.msra.mxu0 %v1016_v9 }
 0x3f0   :  { %1608 = vmatprep.subr.mxu0 %v1692_v46 }
 0x3f1   :  { %1609 = vmatpush3.msra.mxu0 %v1015_v12 }
 0x3f2   :  { %1610 = vmatprep.subr.mxu0 %v1692_v46 }
 0x3f3   :  { %1611 = vmatpush3.msra.mxu0 %v1014_v17 }
 0x3f4   :  { %1612 = vmatprep.subr.mxu0 %v1692_v46 }
 0x3f5   :  { %1613 = vmatpush3.msra.mxu0 %v1013_v18 }
 0x3f6   :  { %1614 = vmatprep.subr.mxu0 %v1692_v46 }
 0x3f7   :  { %1615 = vmatpush3.msra.mxu0 %v1012_v19 }
 0x3f8   :  { %1616 = vmatprep.subr.mxu0 %v1692_v46 }
 0x3f9   :  { %1617 = vmatpush3.msra.mxu0 %v1011_v20 }
 0x3fa   :  { %1618 = vmatprep.subr.mxu0 %v1692_v46 }
 0x3fb   :  { %1619 = vmatpush3.msra.mxu0 %v1010_v21 }
 0x3fc   :  { %1620 = vmatprep.subr.mxu0 %v1692_v46 }
 0x3fd   :  { %1621 = vmatpush3.msra.mxu0 %v1009_v22 }
 0x3fe   :  { %1622 = vmatprep.subr.mxu0 %v1692_v46 }
 0x3ff   :  { %1623 = vmatpush3.msra.mxu0 %v1008_v23 }
 0x400   :  { %1625 = vmatmul.mubr.f32.vlgmr.msra.gmra.mxu0 %v1007_v24 }
 0x4a0   :  { %v1566_v30 = vpop.f32.mrf.mxu0 }
 0x4a1   :  { %v874_v31 = vadd.f32 %v1566_v30, %v1341_v29 }
 0x4a2   :  { %v868_v32 = vpop.f32.mrf.mxu0 }
 0x4a3   :  { %v869_v33 = vadd.f32 %v1341_v29, %v868_v32  ;;  %v888_v36 = vmax.f32 %v874_v31, 0.0 }
 0x4a4   :  { %v1569_v34 = vpop.f32.mrf.mxu0 }
 0x4a5   :  { %v887_v35 = vmax.f32 %v869_v33, 0.0  ;;  %v884_v37 = vadd.f32 %v1569_v34, %v1341_v29 }
 0x4a6   :  { %v878_v38 = vpop.f32.mrf.mxu0 }
 0x4a7   :  { %v879_v40 = vadd.f32 %v1341_v29, %v878_v38  ;;  %1586 = vmatprep.mubr.msk.f32.mxu1 %vm324_vm2, %v887_v35  ;;  %v890_v43 = vmax.f32 %v884_v37, 0.0 }
 0x4a8   :  { %1587 = vmatmul.mubr.msk.f32.vlgmr.msra.gmra.mxu1 %vm324_vm2, %v888_v36 }
 0x4a9   :  { %v889_v42 = vmax.f32 %v879_v40, 0.0  ;;  %1628 = vmatpush3.msra.mxu1 %v1105_v39 }
 0x4aa   :  { %1629 = vmatprep.subr.mxu1 %v1692_v46 }
 0x4ab   :  { %1589 = vmatprep.mubr.msk.f32.mxu1 %vm324_vm2, %v889_v42  ;;  %1630 = vmatpush3.msra.mxu1 %v1104_v41 }
 0x4ac   :  { %1590 = vmatmul.mubr.msk.f32.gmra.mxu1 %vm324_vm2, %v890_v43  ;;  %1631 = vmatprep.subr.mxu1 %v1692_v46 }
 0x4ad   :  { %1632 = vmatpush3.msra.mxu1 %v1103_v44  ;;  %1635 = vmatprep.mubr.msk.f32.mxu1 %vm1693_vm6, %v1692_v46 }
 0x4ae   :  { %1633 = vmatprep.subr.mxu1 %v1692_v46 }
 0x4af   :  { %1634 = vmatpush3.msra.mxu1 %v1102_v45 }
 0x4b0   :  { %1638 = vmatprep.subr.mxu1 %v1692_v46 }
 0x4c0   :  { %v1097_v48 = vpop.f32.mrf.mxu0 }
 0x4c1   :  { %v1098_v49 = vadd.f32 %v1351_v47, %v1097_v48 }
 0x4c2   :  { %v1626_v50 = vpop.f32.mrf.mxu0 }
 0x4c3   :  { %v1101_v51 = vmax.f32 %v1098_v49, 0.0 }
 0x4c5   :  { %1636 = vmatmul.mubr.msk.f32.vlgmr.msra.gmra.mxu1 %vm437_vm3, %v1101_v51 }
 0x4c6   :  { %1646 = vmatprep.mubr.msk.f32.mxu1 %vm1693_vm6, %v1692_v46  ;;  %1639 = vmatpush3.msra.mxu1 %v1190_v52 }
 0x4c7   :  { %1640 = vmatprep.subr.mxu1 %v1692_v46 }
 0x4c8   :  { %1641 = vmatpush3.msra.mxu1 %v1189_v53 }
 0x4c9   :  { %1642 = vmatprep.subr.mxu1 %v1692_v46 }
 0x4ca   :  { %1643 = vmatpush3.msra.mxu1 %v1188_v54 }
 0x4cb   :  { %1644 = vmatprep.subr.mxu1 %v1692_v46 }
 0x4cc   :  { %1645 = vmatpush3.msra.mxu1 %v1187_v55 }
 0x568   :  { %v1588_v57 = vpop.f32.mrf.mxu1 }
 0x569   :  { %v990_v58 = vadd.f32 %v1588_v57, %v1346_v56 }
 0x56a   :  { %v984_v59 = vpop.f32.mrf.mxu1 }
 0x56b   :  { %1004 = vst [vmem:[#allocation2 + $0x8] sm:$0xff] %v990_v58  ;;  %v985_v60 = vadd.f32 %v1346_v56, %v984_v59 }
 0x56c   :  { %v1591_v61 = vpop.f32.mrf.mxu1 }
 0x56d   :  { %1003 = vst [vmem:[#allocation2] sm:$0xff] %v985_v60  ;;  %v1000_v62 = vadd.f32 %v1591_v61, %v1346_v56 }
 0x56e   :  { %v994_v63 = vpop.f32.mrf.mxu1 }
 0x56f   :  { %1006 = vst [vmem:[#allocation2 + $0x18] sm:$0xff] %v1000_v62  ;;  %v995_v46 = vadd.f32 %v1346_v56, %v994_v63 }
 0x571   :  { %1005 = vst [vmem:[#allocation2 + $0x10] sm:$0xff] %v995_v46 }
 0x585   :  { %v1182_v1 = vpop.f32.mrf.mxu1 }
 0x586   :  { %v1183_v2 = vadd.f32 %v1352_v0, %v1182_v1 }
 0x587   :  { %v1637_v3 = vpop.f32.mrf.mxu1 }
 0x588   :  { %v1186_v4 = vmax.f32 %v1183_v2, 0.0 }
 0x58a   :  { %1647 = vmatmul.mubr.msk.f32.vlgmr.msra.gmra.mxu1 %vm437_vm3, %v1186_v4 }
 0x64a   :  { %v1267_v8 = vpop.f32.mrf.mxu1 }
 0x64b   :  { %v1268_v10 = vadd.f32 %v1354_v7, %v1267_v8 }
 0x64c   :  { %v1648_v11 = vpop.f32.mrf.mxu1 }
 0x64d   :  { %v1271_v5 = vsel %vm107_vm1, %v1268_v10, -inf }
 0x64e   :  { %1272 = vmax.xlane.f32.xlu0 %v1271_v5 }
 0x6d7   :  { %v1273_v13 = vpop.xlane.xlu0 %1272 }
 0x6d8   :  { %v1274_v14 = vsub.f32 %v1268_v10, %v1273_v13 }
 0x6da   :  { %v1275_v15 = vmul.f32 1.442695, %v1274_v14 }
 0x6dc   :  { %1663 = vpow2.f32 %v1275_v15 }
 0x6e9   :  { %v1664_v16 = vpop.eup %1663 }
 0x6ea   :  { %v1277_v6 = vsel %vm107_vm1, %v1664_v16, 0.0 }
 0x6eb   :  { %1278 = vadd.xlane.f32.xlu1 %v1277_v6 }
 0x6ec   :  { %1680 = shalt.err (!%p1677_p4)
}
 0x6ed   :  { %s1695_s23 = smov 128   ;;  %s1696_s9 = smov 8  }
 0x6ee   :  { %1300 = dma.vmem_to_hbm [thread:$0]  %s1295_s4, 512, %s2230_s25, [#allocation3], %s1695_s23, %s1695_s23, %s1696_s9  }
 0x774   :  { %v1279_v9 = vpop.xlane.xlu1 %1278 }
 0x775   :  { %1665 = vrcp.f32 %v1279_v9 }
 0x776   :  { %1667 = vlog2.f32 %v1279_v9 }
 0x782   :  { %v1666_v12 = vpop.eup %1665 }
 0x783   :  { %v1668_v17 = vpop.eup %1667  ;;  %v1281_v18 = vmul.f32 %v1666_v12, %v1664_v16 }
 0x784   :  { %v1284_v19 = vmul.f32 0.6931472, %v1668_v17 }
 0x785   :  { %1282 = vst.msk [vmem:[%s2231_s26] sm:$0xff] %vm107_vm1, %v1281_v18 }
 0x786   :  { %v1285_v20 = vsub.f32 %v1274_v14, %v1284_v19 }
 0x788   :  { %1286 = vst.msk [vmem:[%s2232_s27] sm:$0xff] %vm107_vm1, %v1285_v20 }
 0x789   :  { %1689 = dma.done.wait [#allocation3], 512  }
 0x78a   :  { %1690 = vsyncadd [#allocation3], 4294966784 }
 0x78b   :  { %1314 = vsyncpa [#allocation3], 1 }

</bundles_post_ra>
